<compile_context>
chip_gen: v7x
topology: tpu7x:2x2x1
jax: 0.10.0
libtpu: 0.0.40
codegen_flags: <defaults>
</compile_context>

<pallas_src>
import numpy as np
import jax
import jax.numpy as jnp
from jax.experimental import pallas as pl
from jax.experimental.pallas import tpu as pltpu


# ----------------------------------------------------------------------------
# Pallas kernel: Nb images ([Nb, C, HW] block) per grid step
# ----------------------------------------------------------------------------
def scse_kernel(x_ref,      # [Nb, C, HW]  images, channels-on-sublanes, HW on lanes
                ws_ref,     # [C, 1]       spatial-gate 1x1 conv weight
                bs_ref,     # [1]          spatial-gate 1x1 conv bias (SMEM)
                w1t_ref,    # [C, Cr]      fc1 weight, transposed (in, out)
                b1_ref,     # [1, Cr]      fc1 bias
                w2_ref,     # [C, Cr]      fc2 weight (out, in)
                b2_ref,     # [C, 1]       fc2 bias
                o_ref):     # [Nb, C, HW]
    # ---- phase 1: compute both gates (all math in f32) ----------------------
    x = x_ref[...].astype(jnp.float32)                               # [Nb, C, HW]
    ws = ws_ref[...].astype(jnp.float32)                             # [C, 1]
    w1t = w1t_ref[...].astype(jnp.float32)                           # [C, Cr]
    b1 = b1_ref[...].astype(jnp.float32)                             # [1, Cr]
    w2 = w2_ref[...].astype(jnp.float32)                             # [C, Cr]
    b2 = b2_ref[...].astype(jnp.float32)                             # [C, 1]

    # SpatialGate2d: per-pixel 1x1 conv over channels -> sigmoid
    # sublane-axis reduction over C; kept on VPU/XLU (C=32 is far too small
    # for the MXU).
    logit_s = jnp.sum(x * ws[None, :, :], axis=1, keepdims=True) + bs_ref[0]
    gate_s = jax.nn.sigmoid(logit_s)                                 # [Nb, 1, HW]

    # ChannelGate2d: global avg-pool -> fc1 -> relu -> fc2 -> sigmoid
    m = jnp.mean(x, axis=2, keepdims=True)                           # [Nb, C, 1]
    h = jnp.maximum(
        jnp.sum(w1t[None, :, :] * m, axis=1, keepdims=True) + b1[None, :, :],
        0.0)                                                         # [Nb, 1, Cr]
    gate_c = jax.nn.sigmoid(
        jnp.sum(w2[None, :, :] * h, axis=2, keepdims=True) + b2[None, :, :])
    # gate_c: [Nb, C, 1]

    # ---- phase 2: apply gates (re-load x from VMEM to cap vreg pressure) ----
    xr = x_ref[...].astype(jnp.float32)
    o_ref[...] = (xr * (gate_s + gate_c)).astype(o_ref.dtype)


# ----------------------------------------------------------------------------
# Block-size selection: as many images per grid step as VMEM comfortably
# allows, while keeping >= 2 grid steps (v7x megacore) and dividing N evenly.
# ----------------------------------------------------------------------------
def _pick_images_per_block(N, C, HW, itemsize, vmem_budget_bytes=16 << 20):
    per_img = C * HW * itemsize
    # in + out, each double-buffered  ->  4 buffers of the block
    max_nb = max(1, int(vmem_budget_bytes // (4 * per_img)))
    if N >= 2:
        max_nb = min(max_nb, max(1, N // 2))   # keep grid length >= 2
    nb = 1
    for d in range(1, min(max_nb, N) + 1):
        if N % d == 0:
            nb = d
    return nb


# ----------------------------------------------------------------------------
# Wrapper: NCHW in, NCHW out (reshape only, no transposes, dtype-preserving)
# ----------------------------------------------------------------------------
def scse_forward(x_nchw, params):
    N, C, H, W = x_nchw.shape
    HW = H * W
    Cr = params["w1t"].shape[1]
    dtype = x_nchw.dtype
    itemsize = jnp.dtype(dtype).itemsize

    Nb = _pick_images_per_block(N, C, HW, itemsize)
    grid = (N // Nb,)

    xk = x_nchw.reshape(N, C, HW)

    weight_bytes = 4 * (C * 1 + 1 + C * Cr + Cr + C * Cr + C)
    cost = pl.CostEstimate(
        flops=5 * N * C * HW,
        transcendentals=N * (HW + C),
        bytes_accessed=2 * N * C * HW * itemsize + weight_bytes,
    )

    out = pl.pallas_call(
        scse_kernel,
        out_shape=jax.ShapeDtypeStruct((N, C, HW), dtype),
        grid=grid,
        in_specs=[
            pl.BlockSpec((Nb, C, HW), lambda n: (n, 0, 0)),                 # x (pipelined)
            pl.BlockSpec((C, 1), lambda n: (0, 0)),                         # ws
            pl.BlockSpec(memory_space=pltpu.MemorySpace.SMEM),              # bs (scalar)
            pl.BlockSpec((C, Cr), lambda n: (0, 0)),                        # w1t
            pl.BlockSpec((1, Cr), lambda n: (0, 0)),                        # b1
            pl.BlockSpec((C, Cr), lambda n: (0, 0)),                        # w2
            pl.BlockSpec((C, 1), lambda n: (0, 0)),                         # b2
        ],
        out_specs=pl.BlockSpec((Nb, C, HW), lambda n: (n, 0, 0)),
        compiler_params=pltpu.CompilerParams(
            dimension_semantics=("parallel",),
            vmem_limit_bytes=32 * 1024 * 1024,
        ),
        cost_estimate=cost,
    )(xk, params["ws"], params["bs"], params["w1t"], params["b1"],
      params["w2"], params["b2"])

    return out.reshape(N, C, H, W)


# ----------------------------------------------------------------------------
# Pure-JAX reference (independent, exact f32 elementwise formulation)
# ----------------------------------------------------------------------------
def reference_forward(x, tp):
    N, C, H, W = x.shape
    x = x.astype(jnp.float32)
    ws = tp["ws_t"].reshape(C)
    w1 = tp["w1_t"].reshape(-1, C)          # [Cr, C]
    w2 = tp["w2_t"].reshape(C, -1)          # [C, Cr]

    # SpatialGate2d
    logit = jnp.sum(x * ws[None, :, None, None], axis=1, keepdims=True) + tp["bs_t"][0]
    xs = jax.nn.sigmoid(logit) * x

    # ChannelGate2d
    m = jnp.mean(x, axis=(2, 3))                                              # [N, C]
    h = jnp.maximum(jnp.sum(m[:, None, :] * w1[None, :, :], axis=2)
                    + tp["b1_t"][None, :], 0.0)                               # [N, Cr]
    gate_c = jax.nn.sigmoid(jnp.sum(h[:, None, :] * w2[None, :, :], axis=2)
                            + tp["b2_t"][None, :])                            # [N, C]
    xc = gate_c[:, :, None, None] * x
    return xs + xc


# ----------------------------------------------------------------------------
if __name__ == "__main__":
    N, C, H, W = 2, 32, 16, 16
    reduction = 16                       # module default
    Cr = C // reduction                  # = 2

    key = jax.random.PRNGKey(0)
    ks = jax.random.split(key, 8)

    # PyTorch-shaped ("torch layout") parameters
    tp = {
        "ws_t": jax.random.normal(ks[0], (1, C, 1, 1), jnp.float32) * np.sqrt(1.0 / C),
        "bs_t": 0.05 * jax.random.normal(ks[1], (1,), jnp.float32),
        "w1_t": jax.random.normal(ks[2], (Cr, C, 1, 1), jnp.float32) * np.sqrt(1.0 / C),
        "b1_t": 0.05 * jax.random.normal(ks[3], (Cr,), jnp.float32),
        "w2_t": jax.random.normal(ks[4], (C, Cr, 1, 1), jnp.float32) * np.sqrt(1.0 / Cr),
        "b2_t": 0.05 * jax.random.normal(ks[5], (C,), jnp.float32),
    }

    # kernel-layout parameters (weights stay f32; kernel math is f32 regardless)
    params = {
        "ws":  tp["ws_t"].reshape(C, 1),
        "bs":  tp["bs_t"].astype(jnp.float32),             # (1,) scalar in SMEM
        "w1t": tp["w1_t"].reshape(Cr, C).T,                 # [C, Cr]
        "b1":  tp["b1_t"].reshape(1, Cr),
        "w2":  tp["w2_t"].reshape(C, Cr),                   # [C, Cr]
        "b2":  tp["b2_t"].reshape(C, 1),
    }

    x = jax.random.normal(ks[6], (N, C, H, W), jnp.float32)
    ref = jax.block_until_ready(reference_forward(x, tp))

    # f32 I/O path
    out_f32 = jax.block_until_ready(scse_forward(x, params))
    assert out_f32.dtype == jnp.float32
    np.testing.assert_allclose(np.asarray(out_f32), np.asarray(ref),
                               rtol=1e-4, atol=1e-4)

    # bf16 I/O path (native model dtype): half the HBM bytes, f32 math inside
    x_bf16 = x.astype(jnp.bfloat16)
    out_bf16 = jax.block_until_ready(scse_forward(x_bf16, params))
    assert out_bf16.dtype == jnp.bfloat16
    ref_bf16 = reference_forward(x_bf16.astype(jnp.float32), tp)
    np.testing.assert_allclose(np.asarray(out_bf16, dtype=np.float32),
                               np.asarray(ref_bf16),
                               rtol=3e-2, atol=3e-2)

    print("KERNEL_OK")
</pallas_src>

<mosaic_0001>
module attributes {stable_mosaic.version = 11 : i64} {
  func.func @scse_kernel(%arg0: i32, %arg1: memref<1x32x256xf32, #tpu.memory_space<vmem>>, %arg2: memref<32x1xf32, #tpu.memory_space<vmem>>, %arg3: memref<1xf32, #tpu.memory_space<smem>>, %arg4: memref<32x2xf32, #tpu.memory_space<vmem>>, %arg5: memref<1x2xf32, #tpu.memory_space<vmem>>, %arg6: memref<32x2xf32, #tpu.memory_space<vmem>>, %arg7: memref<32x1xf32, #tpu.memory_space<vmem>>, %arg8: memref<1x32x256xf32, #tpu.memory_space<vmem>>) attributes {dimension_semantics = [#tpu.dimension_semantics<parallel>], iteration_bounds = array<i64: 2>, scalar_prefetch = 0 : i64, scratch_operands = 0 : i64, tpu.core_type = #tpu.core_type<tc>, window_params = [{transform_indices = @transform_0, window_bounds = array<i64: 1, 32, 256>}, {pipeline_mode = #tpu.pipeline_mode<synchronous>, transform_indices = @transform_1, window_bounds = array<i64: 32, 1>}, {transform_indices = @transform_2, window_bounds = array<i64: 1>}, {pipeline_mode = #tpu.pipeline_mode<synchronous>, transform_indices = @transform_3, window_bounds = array<i64: 32, 2>}, {pipeline_mode = #tpu.pipeline_mode<synchronous>, transform_indices = @transform_4, window_bounds = array<i64: 1, 2>}, {pipeline_mode = #tpu.pipeline_mode<synchronous>, transform_indices = @transform_5, window_bounds = array<i64: 32, 2>}, {pipeline_mode = #tpu.pipeline_mode<synchronous>, transform_indices = @transform_6, window_bounds = array<i64: 32, 1>}, {transform_indices = @transform_7, window_bounds = array<i64: 1, 32, 256>}]} {
    %c0 = arith.constant 0 : index
    %c0_0 = arith.constant 0 : index
    %c0_1 = arith.constant 0 : index
    %0 = vector.load %arg1[%c0, %c0_0, %c0_1] : memref<1x32x256xf32, #tpu.memory_space<vmem>>, vector<1x32x256xf32>
    %c0_2 = arith.constant 0 : index
    %c0_3 = arith.constant 0 : index
    %1 = vector.load %arg2[%c0_2, %c0_3] : memref<32x1xf32, #tpu.memory_space<vmem>>, vector<32x1xf32>
    %c0_4 = arith.constant 0 : index
    %c0_5 = arith.constant 0 : index
    %2 = vector.load %arg4[%c0_4, %c0_5] : memref<32x2xf32, #tpu.memory_space<vmem>>, vector<32x2xf32>
    %c0_6 = arith.constant 0 : index
    %c0_7 = arith.constant 0 : index
    %3 = vector.load %arg5[%c0_6, %c0_7] : memref<1x2xf32, #tpu.memory_space<vmem>>, vector<1x2xf32>
    %c0_8 = arith.constant 0 : index
    %c0_9 = arith.constant 0 : index
    %4 = vector.load %arg6[%c0_8, %c0_9] : memref<32x2xf32, #tpu.memory_space<vmem>>, vector<32x2xf32>
    %c0_10 = arith.constant 0 : index
    %c0_11 = arith.constant 0 : index
    %5 = vector.load %arg7[%c0_10, %c0_11] : memref<32x1xf32, #tpu.memory_space<vmem>>, vector<32x1xf32>
    %6 = vector.shape_cast %1 : vector<32x1xf32> to vector<1x32x1xf32>
    %7 = vector.broadcast %6 : vector<1x32x1xf32> to vector<1x32x256xf32>
    %8 = arith.mulf %0, %7 : vector<1x32x256xf32>
    %cst = arith.constant dense<0.000000e+00> : vector<1x256xf32>
    %9 = vector.multi_reduction <add>, %8, %cst [1] : vector<1x32x256xf32> to vector<1x256xf32>
    %10 = vector.shape_cast %9 : vector<1x256xf32> to vector<1x1x256xf32>
    %c0_12 = arith.constant 0 : index
    %11 = memref.load %arg3[%c0_12] : memref<1xf32, #tpu.memory_space<smem>>
    %12 = vector.broadcast %11 : f32 to vector<1x1x256xf32>
    %13 = arith.addf %10, %12 : vector<1x1x256xf32>
    %14 = arith.negf %13 : vector<1x1x256xf32>
    %15 = math.exp %14 : vector<1x1x256xf32>
    %cst_13 = arith.constant 1.000000e+00 : f32
    %16 = vector.broadcast %cst_13 : f32 to vector<1x1x256xf32>
    %17 = arith.addf %16, %15 : vector<1x1x256xf32>
    %18 = arith.divf %16, %17 : vector<1x1x256xf32>
    %cst_14 = arith.constant dense<0.000000e+00> : vector<1x32xf32>
    %19 = vector.multi_reduction <add>, %0, %cst_14 [2] : vector<1x32x256xf32> to vector<1x32xf32>
    %20 = vector.shape_cast %19 : vector<1x32xf32> to vector<1x32x1xf32>
    %cst_15 = arith.constant 2.560000e+02 : f32
    %21 = vector.broadcast %cst_15 : f32 to vector<1x32x1xf32>
    %22 = arith.divf %20, %21 : vector<1x32x1xf32>
    %23 = vector.shape_cast %2 : vector<32x2xf32> to vector<1x32x2xf32>
    %24 = vector.broadcast %22 : vector<1x32x1xf32> to vector<1x32x2xf32>
    %25 = arith.mulf %23, %24 : vector<1x32x2xf32>
    %cst_16 = arith.constant dense<0.000000e+00> : vector<1x2xf32>
    %26 = vector.multi_reduction <add>, %25, %cst_16 [1] : vector<1x32x2xf32> to vector<1x2xf32>
    %27 = vector.shape_cast %26 : vector<1x2xf32> to vector<1x1x2xf32>
    %28 = vector.shape_cast %3 : vector<1x2xf32> to vector<1x1x2xf32>
    %29 = arith.addf %27, %28 : vector<1x1x2xf32>
    %cst_17 = arith.constant 0.000000e+00 : f32
    %30 = vector.broadcast %cst_17 : f32 to vector<1x1x2xf32>
    %31 = arith.maximumf %29, %30 : vector<1x1x2xf32>
    %32 = vector.shape_cast %4 : vector<32x2xf32> to vector<1x32x2xf32>
    %33 = vector.broadcast %31 : vector<1x1x2xf32> to vector<1x32x2xf32>
    %34 = arith.mulf %32, %33 : vector<1x32x2xf32>
    %cst_18 = arith.constant dense<0.000000e+00> : vector<1x32xf32>
    %35 = vector.multi_reduction <add>, %34, %cst_18 [2] : vector<1x32x2xf32> to vector<1x32xf32>
    %36 = vector.shape_cast %35 : vector<1x32xf32> to vector<1x32x1xf32>
    %37 = vector.shape_cast %5 : vector<32x1xf32> to vector<1x32x1xf32>
    %38 = arith.addf %36, %37 : vector<1x32x1xf32>
    %39 = arith.negf %38 : vector<1x32x1xf32>
    %40 = math.exp %39 : vector<1x32x1xf32>
    %cst_19 = arith.constant 1.000000e+00 : f32
    %41 = vector.broadcast %cst_19 : f32 to vector<1x32x1xf32>
    %42 = arith.addf %41, %40 : vector<1x32x1xf32>
    %43 = arith.divf %41, %42 : vector<1x32x1xf32>
    %c0_20 = arith.constant 0 : index
    %c0_21 = arith.constant 0 : index
    %c0_22 = arith.constant 0 : index
    %44 = vector.load %arg1[%c0_20, %c0_21, %c0_22] : memref<1x32x256xf32, #tpu.memory_space<vmem>>, vector<1x32x256xf32>
    %45 = vector.broadcast %18 : vector<1x1x256xf32> to vector<1x32x256xf32>
    %46 = vector.broadcast %43 : vector<1x32x1xf32> to vector<1x32x256xf32>
    %47 = arith.addf %45, %46 : vector<1x32x256xf32>
    %48 = arith.mulf %44, %47 : vector<1x32x256xf32>
    %c0_23 = arith.constant 0 : index
    %c0_24 = arith.constant 0 : index
    %c0_25 = arith.constant 0 : index
    %49 = vector.load %arg8[%c0_23, %c0_24, %c0_25] : memref<1x32x256xf32, #tpu.memory_space<vmem>>, vector<1x32x256xf32>
    tpu.vector_store %arg8[%c0_23, %c0_24, %c0_25], %48 {strides = array<i32>} : memref<1x32x256xf32, #tpu.memory_space<vmem>>, vector<1x32x256xf32>,
    return
  }
  func.func @transform_0(%arg0: i32) -> (i32, i32, i32) {
    %c0_i32 = arith.constant 0 : i32
    %c0_i32_0 = arith.constant 0 : i32
    %c0_i32_1 = arith.constant 0 : i32
    return %arg0, %c0_i32, %c0_i32_0 : i32, i32, i32
  }
  func.func @transform_1(%arg0: i32) -> (i32, i32) {
    %c0_i32 = arith.constant 0 : i32
    %c0_i32_0 = arith.constant 0 : i32
    %c0_i32_1 = arith.constant 0 : i32
    return %c0_i32, %c0_i32_0 : i32, i32
  }
  func.func @transform_2(%arg0: i32) -> i32 {
    %c0_i32 = arith.constant 0 : i32
    %c0_i32_0 = arith.constant 0 : i32
    return %c0_i32 : i32
  }
  func.func @transform_3(%arg0: i32) -> (i32, i32) {
    %c0_i32 = arith.constant 0 : i32
    %c0_i32_0 = arith.constant 0 : i32
    %c0_i32_1 = arith.constant 0 : i32
    return %c0_i32, %c0_i32_0 : i32, i32
  }
  func.func @transform_4(%arg0: i32) -> (i32, i32) {
    %c0_i32 = arith.constant 0 : i32
    %c0_i32_0 = arith.constant 0 : i32
    %c0_i32_1 = arith.constant 0 : i32
    return %c0_i32, %c0_i32_0 : i32, i32
  }
  func.func @transform_5(%arg0: i32) -> (i32, i32) {
    %c0_i32 = arith.constant 0 : i32
    %c0_i32_0 = arith.constant 0 : i32
    %c0_i32_1 = arith.constant 0 : i32
    return %c0_i32, %c0_i32_0 : i32, i32
  }
  func.func @transform_6(%arg0: i32) -> (i32, i32) {
    %c0_i32 = arith.constant 0 : i32
    %c0_i32_0 = arith.constant 0 : i32
    %c0_i32_1 = arith.constant 0 : i32
    return %c0_i32, %c0_i32_0 : i32, i32
  }
  func.func @transform_7(%arg0: i32) -> (i32, i32, i32) {
    %c0_i32 = arith.constant 0 : i32
    %c0_i32_0 = arith.constant 0 : i32
    %c0_i32_1 = arith.constant 0 : i32
    return %arg0, %c0_i32, %c0_i32_0 : i32, i32, i32
  }
}

</mosaic_0001>

<bundles_post_ra>
// kernel: tpu_custom_call.1
= control target key start
LH: loop header
LB: loop body
LE: loop exit
PB: predicated region body
PF: predicated region fallthrough
CT: control target
= control target key end

     0   :  { %s975_s0 = inlined_call_operand.vmem [shape: f32[2,32,256], index: 0, kind: input, shape index: {}]   ;;  %s976_s1 = inlined_call_operand.vmem [shape: f32[32,1], index: 1, kind: input, shape index: {}]   ;;  %s977_s2 = inlined_call_operand.<no memory space> [shape: f32[1], index: 2, kind: input, shape index: {}]   ;;  %s978_s3 = inlined_call_operand.vmem [shape: f32[32,2], index: 3, kind: input, shape index: {}]   ;;  %s979_s4 = inlined_call_operand.vmem [shape: f32[1,2], index: 4, kind: input, shape index: {}]   ;;  %s980_s5 = inlined_call_operand.vmem [shape: f32[32,2], index: 5, kind: input, shape index: {}]   ;;  %s981_s6 = inlined_call_operand.vmem [shape: f32[32,1], index: 6, kind: input, shape index: {}]   ;;  %s982_s7 = inlined_call_operand.hbm [shape: f32[2,32,256], index: 7, kind: output, shape index: {}]  }
   0x1   :  { %12 = sst [smem:[#allocation2]] %s977_s2 }
   0x2   :  { %13 = vsyncpa [#allocation4], 0 }
   0x3   :  { %15 = vsyncpa [#allocation4 + $0x1], 0  ;;  %s769_s26 = smov 0   ;;  %s771_s27 = smov 0  }
   0x4   :  { %s773_s28 = smov 0   ;;  %s775_s29 = smov 0  }
   0x5 LB: > { %s790_s2 = sadd.s32 4294967295, %s720_s29   ;;  %s570_s30 = sadd.s32 4294967294, %s720_s29   ;;  %s720_s29 = sphi %s775_s29, %s988_s29   ;;  %s716_s28 = sphi %s773_s28, %s987_s28   ;;  %s712_s27 = sphi %s771_s27, %s986_s27   ;;  %s708_s26 = sphi %s769_s26, %s985_s26  }
   0x6   : > { %s794_s8 = sadd.s32 1, %s720_s29   ;;  %s180_s9 = sadd.s32 1, %s716_s28 }
   0x7   : > { %s177_s10 = ssub.s32 %s720_s29, %s794_s8  ;;  %p190_p0 = scmp.ne.s32.totalorder %s716_s28, %s712_s27 }
   0x8   : > { %p178_p1 = scmp.eq.s32.totalorder %s177_s10, 0  ;;  %p191_p2 = scmp.eq.s32.totalorder %s790_s2, 1 }
   0x9   : > { %p196_p3 = scmp.ne.s32.totalorder %s712_s27, %s708_s26  ;;  %p197_p4 = scmp.eq.s32.totalorder %s570_s30, 1 }
   0xa   : > { %s805_s11 = scalar_select %p178_p1, %s716_s28, %s180_s9  }
   0xb   : > { %p807_p5 = por %p191_p2, %p190_p0  ;;  %p811_p6 = por %p197_p4, %p196_p3 }
   0xc   : > { %p573_p7 = scmp.ge.s32.totalorder %s720_s29, 1  ;;  %p241_p8 = scmp.lt.s32.totalorder %s720_s29, 3 }
   0xe   : > { %p242_p9 = pnand %p573_p7, %p241_p8 }
   0xf   : > { %p273_p10 = scmp.lt.s32.totalorder (!%p242_p9), %s790_s2, 1  ;;  %v722_v12 = vmov (!%p242_p9), 0   ;;  %v290_v16 = vld [vmem:[%s978_s3] sm:$0xff] (!%p242_p9)  ;;  %v292_v18 = vld [vmem:[%s978_s3 + $0x10] sm:$0xff] (!%p242_p9)  ;;  %v291_v19 = vld [vmem:[%s978_s3 + $0x8] sm:$0xff] (!%p242_p9)  ;;  %vm386_vm0 = vcmask (!%p242_p9), 15360   ;;  %v402_v39 = vlaneseq (!%p242_p9) }
  0x10   : > { %245 = sbr.rel (%p242_p9) target bundleno = 538 (0x21a), region = 48  ;;  %633 = vset.pattern.permute.xlu1 (!%p242_p9), %v722_v12  ;;  %632 = vset.pattern.permute.xlu0 (!%p242_p9), %v722_v12  ;;  %v293_v23 = vld [vmem:[%s978_s3 + $0x18] sm:$0xff] (!%p242_p9)  ;;  %v294_v43 = vld [vmem:[%s979_s4] sm:$0x1] (!%p242_p9)  ;;  %v296_v48 = vld [vmem:[%s980_s5 + $0x8] sm:$0xff] (!%p242_p9)  ;;  %s349_s23 = sld [smem:[#allocation2]] (!%p242_p9) }
  0x11   : > { %v403_v42 = vshrl.u32 (!%p242_p9), %v402_v39, 7  ;;  %v295_v49 = vld [vmem:[%s980_s5] sm:$0xff] (!%p242_p9)  ;;  %v298_v51 = vld [vmem:[%s980_s5 + $0x18] sm:$0xff] (!%p242_p9)  ;;  %v297_v52 = vld [vmem:[%s980_s5 + $0x10] sm:$0xff] (!%p242_p9)  ;;  %s270_s24 = sand.u32 (!%p242_p9), 1, %s712_s27   ;;  %s589_s9 = sshll.u32 (!%p242_p9), %s790_s2, 10 }
  0x12   : > { %v287_v61 = vld [vmem:[%s976_s1 + $0x8] sm:$0xff] (!%p242_p9)  ;;  %v288_v62 = vld [vmem:[%s976_s1 + $0x10] sm:$0xff] (!%p242_p9)  ;;  %v286_v63 = vld [vmem:[%s976_s1] sm:$0xff] (!%p242_p9)  ;;  %s574_s25 = sshll.u32 (!%p242_p9), %s270_s24, 6  ;;  %s926_s16 = scalar_lea.hbm (!%p242_p9), %s982_s7, %s589_s9 }
  0x13   : > { %v404_v46 = vsub.s32 (!%p242_p9), 0, %v403_v42  ;;  %s272_s30 = scalar_lea.vmem (!%p242_p9), [#allocation3], %s574_s25 }
  0x14   : > { %s508_s10 = sshll.u32 (!%p242_p9), %s272_s30, 4  ;;  %s928_s10 = int_to_ptr.vmem [resolvable:$true] %s508_s10 }
  0x15   : > { %s658_s17 = scalar_lea.vmem (!%p242_p9), %s928_s10, 1024 }
  0x16   : > { %p659_p11 = scmp.ne.s32.totalorder (!%p242_p9), %s928_s10, %s658_s17 }
  0x17   : > { %s274_s14 = scalar_select %p273_p10, %s790_s2, 1 }
  0x18   : > { %s934_s2 = scalar_lea.sflag [#allocation4], %s270_s24  ;;  %p660_p12 = pnand %p659_p11, %p807_p5 }
  0x19   : > { %s588_s15 = sshll.u32 %s274_s14, 6 }
  0x1a   : > { %s277_s18 = scalar_lea.vmem %s975_s0, %s588_s15  ;;  %p661_p13 = pneg %p660_p12 }
  0x1b   : > { %v822_v0 = vld [vmem:[%s277_s18] sm:$0xff]  ;;  %v824_v1 = vld [vmem:[%s277_s18 + $0x8] sm:$0xff]  ;;  %v832_v5 = vld [vmem:[%s277_s18 + $0x10] sm:$0xff] }
  0x1c   : > { %v826_v2 = vld [vmem:[%s277_s18 + $0x20] sm:$0xff]  ;;  %v365_v3 = vadd.f32 %v824_v1, %v822_v0  ;;  %v830_v4 = vld [vmem:[%s277_s18 + $0x28] sm:$0xff]  ;;  %v834_v6 = vld [vmem:[%s277_s18 + $0x18] sm:$0xff] }
  0x1d   : > { %v371_v7 = vadd.f32 %v830_v4, %v826_v2  ;;  %v838_v8 = vld [vmem:[%s277_s18 + $0x30] sm:$0xff]  ;;  %v840_v9 = vld [vmem:[%s277_s18 + $0x38] sm:$0xff]  ;;  %v368_v10 = vadd.f32 %v834_v6, %v832_v5  ;;  %s723_s18 = smov [#allocation3]  }
  0x1e   : > { %366 = vadd.xlane.f32.xlu0 %v365_v3  ;;  %v374_v11 = vadd.f32 %v840_v9, %v838_v8  ;;  %v289_v3 = vld [vmem:[%s976_s1 + $0x18] sm:$0xff]  ;;  %s662_s19 = sshll.u32 %s723_s18, 4  ;;  %s663_s19 = int_to_ptr.vmem [resolvable:$false] %s662_s19 }
  0x1f   : > { %372 = vadd.xlane.f32.xlu1 %v371_v7  ;;  %v300_v7 = vld [vmem:[%s981_s6 + $0x8] sm:$0xff]  ;;  %s664_s20 = scalar_lea.vmem %s663_s19, 2048  ;;  %p665_p0 = scmp.lt.s32.totalorder %s928_s10, %s663_s19 }
  0x20   : > { %p666_p1 = scmp.lt.s32.totalorder %s664_s20, %s658_s17 }
  0x22   : > { %369 = vadd.xlane.f32.xlu0 %v368_v10  ;;  %v299_v10 = vld [vmem:[%s981_s6] sm:$0xff]  ;;  %p667_p2 = por %p666_p1, %p665_p0 }
  0x23   : > { %375 = vadd.xlane.f32.xlu1 %v374_v11 }
  0x24   : > { %p668_p3 = pnand %p667_p2, %p661_p13 }
  0xab   : > { %v367_v13 = vpop.xlane.xlu0 %366 }
  0xac   : > { %v378_v14 = vmul.f32 0.00390625, %v367_v13  ;;  %v373_v15 = vpop.xlane.xlu1 %372 }
  0xad   : > { %v380_v17 = vmul.f32 0.00390625, %v373_v15  ;;  %v301_v15 = vld [vmem:[%s981_s6 + $0x10] sm:$0xff] }
  0xae   : > { %v382_v21 = vmul.f32 %v378_v14, %v290_v16 }
  0xaf   : > { %v370_v20 = vpop.xlane.xlu0 %369  ;;  %v384_v26 = vmul.f32 %v380_v17, %v292_v18  ;;  %v302_v18 = vld [vmem:[%s981_s6 + $0x18] sm:$0xff] }
  0xb0   : > { %v379_v22 = vmul.f32 0.00390625, %v370_v20  ;;  %v376_v24 = vpop.xlane.xlu1 %375  ;;  %v387_v29 = vsel %vm386_vm0, %v382_v21, 0.0 }
  0xb1   : > { %v381_v25 = vmul.f32 0.00390625, %v376_v24  ;;  %v390_v32 = vsel %vm386_vm0, %v384_v26, 0.0 }
  0xb2   : > { %v383_v27 = vmul.f32 %v379_v22, %v291_v19 }
  0xb3   : > { %v385_v28 = vmul.f32 %v381_v25, %v293_v23 }
  0xb4   : > { %v388_v30 = vsel %vm386_vm0, %v383_v27, 0.0 }
  0xb5   : > { %v389_v31 = vadd.f32 %v388_v30, %v387_v29  ;;  %v392_v33 = vsel %vm386_vm0, %v385_v28, 0.0 }
  0xb7   : > { %v391_v34 = vadd.f32 %v390_v32, %v389_v31 }
  0xb9   : > { %v393_v35 = vadd.f32 %v392_v33, %v391_v34 }
  0xbb   : > { %v394_v36 = vrot.slane %v393_v35, 4 }
  0xbd   : > { %v395_v37 = vadd.f32 %v394_v36, %v393_v35 }
  0xbf   : > { %v396_v38 = vrot.slane %v395_v37, 2 }
  0xc1   : > { %v397_v40 = vadd.f32 %v396_v38, %v395_v37 }
  0xc3   : > { %v398_v41 = vrot.slane %v397_v40, 1 }
  0xc5   : > { %v399_v44 = vadd.f32 %v398_v41, %v397_v40 }
  0xc7   : > { %v400_v45 = vadd.f32 %v399_v44, %v294_v43 }
  0xc9   : > { %v401_v47 = vmax.f32 %v400_v45, 0.0 }
  0xcb   : > { %v405_v50 = vrot.slane %v401_v47, %v404_v46 }
  0xcd   : > { %v407_v53 = vmul.f32 %v405_v50, %v296_v48  ;;  %v406_v54 = vmul.f32 %v405_v50, %v295_v49  ;;  %v409_v57 = vmul.f32 %v405_v50, %v298_v51  ;;  %v408_v58 = vmul.f32 %v405_v50, %v297_v52 }
  0xcf   : > { %v413_v55 = vsel %vm386_vm0, %v407_v53, 0.0  ;;  %v410_v56 = vsel %vm386_vm0, %v406_v54, 0.0  ;;  %v419_v59 = vsel %vm386_vm0, %v409_v57, 0.0  ;;  %v416_v60 = vsel %vm386_vm0, %v408_v58, 0.0 }
  0xd0   : > { %414 = vadd.xlane.f32.xlu1 %v413_v55  ;;  %411 = vadd.xlane.f32.xlu0 %v410_v56 }
  0xd4   : > { %420 = vadd.xlane.f32.xlu1 %v419_v59  ;;  %417 = vadd.xlane.f32.xlu0 %v416_v60 }
  0xe5   : > { %310 = vperm.xlu1 %633, %v287_v61  }
  0xe9   : > { %315 = vperm.xlu1 %633, %v288_v62  }
  0xea   : > { %305 = vperm.xlu0 %632, %v286_v63  }
  0xed   : > { %320 = vperm.xlu1 %633, %v289_v3  }
 0x15d   : > { %v415_v11 = vpop.xlane.xlu1 %414  ;;  %v412_v12 = vpop.xlane.xlu0 %411 }
 0x15e   : > { %v423_v13 = vadd.f32 %v415_v11, %v300_v7  ;;  %v422_v14 = vadd.f32 %v412_v12, %v299_v10  ;;  %v350_v10 = vstv %s349_s23 }
 0x160   : > { %v580_v16 = vmul.f32 -1.442695, %v423_v13  ;;  %v579_v17 = vmul.f32 -1.442695, %v422_v14 }
 0x161   : > { %v421_v19 = vpop.xlane.xlu1 %420  ;;  %v418_v20 = vpop.xlane.xlu0 %417 }
 0x162   : > { %634 = vpow2.f32 %v580_v16  ;;  %v424_v21 = vadd.f32 %v418_v20, %v301_v15  ;;  %v425_v22 = vadd.f32 %v421_v19, %v302_v18 }
 0x163   : > { %636 = vpow2.f32 %v579_v17 }
 0x164   : > { %v581_v23 = vmul.f32 -1.442695, %v424_v21  ;;  %v582_v24 = vmul.f32 -1.442695, %v425_v22 }
 0x165   : > { %v311_v37 = vpop.permute.xlu1 %310 }
 0x166   : > { %638 = vpow2.f32 %v581_v23  ;;  %v325_v40 = vmul.f32 %v311_v37, %v832_v5  ;;  %v326_v42 = vmul.f32 %v311_v37, %v834_v6 }
 0x167   : > { %640 = vpow2.f32 %v582_v24 }
 0x169   : > { %v306_v38 = vpop.permute.xlu0 %305  ;;  %v316_v39 = vpop.permute.xlu1 %315 }
 0x16a   : > { %v323_v41 = vmul.f32 %v306_v38, %v822_v0  ;;  %v324_v43 = vmul.f32 %v306_v38, %v824_v1  ;;  %v327_v44 = vmul.f32 %v316_v39, %v826_v2  ;;  %v328_v46 = vmul.f32 %v316_v39, %v830_v4 }
 0x16c   : > { %v635_v25 = vpop.eup %634  ;;  %v331_v45 = vadd.f32 %v325_v40, %v323_v41  ;;  %v340_v47 = vadd.f32 %v326_v42, %v324_v43 }
 0x16d   : > { %v637_v26 = vpop.eup %636  ;;  %v439_v28 = vadd.f32 1.0, %v635_v25  ;;  %v321_v48 = vpop.permute.xlu1 %320 }
 0x16e   : > { %v438_v27 = vadd.f32 1.0, %v637_v26  ;;  %v332_v49 = vadd.f32 %v331_v45, %v327_v44  ;;  %v329_v50 = vmul.f32 %v321_v48, %v838_v8  ;;  %v341_v51 = vadd.f32 %v340_v47, %v328_v46 }
 0x16f   : > { %v330_v52 = vmul.f32 %v321_v48, %v840_v9 }
 0x170   : > { %642 = vrcp.f32 %v438_v27  ;;  %v639_v29 = vpop.eup %638  ;;  %v333_v53 = vadd.f32 %v332_v49, %v329_v50 }
 0x171   : > { %644 = vrcp.f32 %v439_v28  ;;  %v440_v30 = vadd.f32 1.0, %v639_v29  ;;  %v641_v31 = vpop.eup %640  ;;  %v342_v54 = vadd.f32 %v341_v51, %v330_v52 }
 0x172   : > { %v441_v32 = vadd.f32 1.0, %v641_v31  ;;  %v334_v55 = vrot.slane %v333_v53, 4 }
 0x173   : > { %646 = vrcp.f32 %v440_v30  ;;  %v343_v56 = vrot.slane %v342_v54, 4 }
 0x174   : > { %648 = vrcp.f32 %v441_v32  ;;  %v335_v57 = vadd.f32 %v334_v55, %v333_v53 }
 0x175   : > { %v344_v58 = vadd.f32 %v343_v56, %v342_v54 }
 0x176   : > { %v336_v59 = vrot.slane %v335_v57, 2 }
 0x177   : > { %v345_v60 = vrot.slane %v344_v58, 2 }
 0x178   : > { %v337_v61 = vadd.f32 %v336_v59, %v335_v57 }
 0x179   : > { %v346_v62 = vadd.f32 %v345_v60, %v344_v58 }
 0x17a   : > { %v643_v33 = vpop.eup %642  ;;  %v338_v63 = vrot.slane %v337_v61, 1 }
 0x17b   : > { %452 = vperm.xlu1 %633, %v643_v33   ;;  %v645_v34 = vpop.eup %644  ;;  %v347_v3 = vrot.slane %v346_v62, 1 }
 0x17c   : > { %v339_v7 = vadd.f32 %v338_v63, %v337_v61 }
 0x17d   : > { %v647_v35 = vpop.eup %646  ;;  %v348_v11 = vadd.f32 %v347_v3, %v346_v62 }
 0x17e   : > { %v649_v36 = vpop.eup %648  ;;  %v351_v12 = vadd.f32 %v350_v10, %v339_v7 }
 0x17f   : > { %457 = vperm.xlu1 %633, %v645_v34   ;;  %v352_v13 = vadd.f32 %v350_v10, %v348_v11 }
 0x180   : > { %v577_v14 = vmul.f32 -1.442695, %v351_v12 }
 0x181   : > { %v578_v15 = vmul.f32 -1.442695, %v352_v13 }
 0x182   : > { %650 = vpow2.f32 %v577_v14 }
 0x183   : > { %462 = vperm.xlu1 %633, %v647_v35   ;;  %652 = vpow2.f32 %v578_v15 }
 0x187   : > { %467 = vperm.xlu1 %633, %v649_v36  }
 0x18c   : > { %v651_v16 = vpop.eup %650 }
 0x18d   : > { %v653_v17 = vpop.eup %652  ;;  %v359_v18 = vadd.f32 1.0, %v651_v16 }
 0x18e   : > { %v360_v19 = vadd.f32 1.0, %v653_v17 }
 0x18f   : > { %654 = vrcp.f32 %v359_v18 }
 0x190   : > { %656 = vrcp.f32 %v360_v19 }
 0x199   : > { %v655_v20 = vpop.eup %654 }
 0x19a   : > { %v657_v21 = vpop.eup %656 }
 0x1fa   : > { %v453_v22 = vpop.permute.xlu1 %452 }
 0x1fb   : > { %v470_v23 = vadd.f32 %v655_v20, %v453_v22  ;;  %v471_v24 = vadd.f32 %v657_v21, %v453_v22 }
 0x1fd   : > { %v478_v25 = vmul.f32 %v470_v23, %v822_v0  ;;  %v479_v26 = vmul.f32 %v471_v24, %v824_v1 }
 0x1fe   : > { %v458_v27 = vpop.permute.xlu1 %457 }
 0x1ff   : > { %486 = vst [vmem:[%s272_s30] sm:$0xff] %v478_v25  ;;  %487 = vst [vmem:[%s272_s30 + $0x8] sm:$0xff] %v479_v26  ;;  %v472_v28 = vadd.f32 %v655_v20, %v458_v27  ;;  %v473_v29 = vadd.f32 %v657_v21, %v458_v27 }
 0x201   : > { %v480_v30 = vmul.f32 %v472_v28, %v832_v5  ;;  %v481_v31 = vmul.f32 %v473_v29, %v834_v6 }
 0x202   : > { %v463_v32 = vpop.permute.xlu1 %462 }
 0x203   : > { %488 = vst [vmem:[%s272_s30 + $0x10] sm:$0xff] %v480_v30  ;;  %489 = vst [vmem:[%s272_s30 + $0x18] sm:$0xff] %v481_v31  ;;  %v474_v33 = vadd.f32 %v655_v20, %v463_v32  ;;  %v475_v34 = vadd.f32 %v657_v21, %v463_v32 }
 0x205   : > { %v482_v0 = vmul.f32 %v474_v33, %v826_v2  ;;  %v483_v1 = vmul.f32 %v475_v34, %v830_v4 }
 0x206   : > { %v468_v35 = vpop.permute.xlu1 %467 }
 0x207   : > { %490 = vst [vmem:[%s272_s30 + $0x20] sm:$0xff] %v482_v0  ;;  %491 = vst [vmem:[%s272_s30 + $0x28] sm:$0xff] %v483_v1  ;;  %v476_v36 = vadd.f32 %v655_v20, %v468_v35  ;;  %v477_v5 = vadd.f32 %v657_v21, %v468_v35 }
 0x209   : > { %v484_v2 = vmul.f32 %v476_v36, %v838_v8  ;;  %v485_v4 = vmul.f32 %v477_v5, %v840_v9 }
 0x20b   : > { %492 = vst [vmem:[%s272_s30 + $0x30] sm:$0xff] %v484_v2  ;;  %493 = vst [vmem:[%s272_s30 + $0x38] sm:$0xff] %v485_v4 }
 0x20c   : > { %671 = shalt.err (!%p668_p3)
}
 0x20d   : > { %s672_s21 = scalar_lea.hbm %s926_s16, 1024  ;;  %s676_s24 = scalar_lea.hbm %s982_s7, 2048 }
 0x20e   : > { %p673_p4 = scmp.ne.s32.totalorder %s926_s16, %s672_s21  ;;  %p677_p9 = scmp.lt.u32.totalorder %s926_s16, %s982_s7 }
 0x20f   : > { %p678_p10 = scmp.lt.u32.totalorder %s676_s24, %s672_s21  ;;  %p680_p12 = scmp.lt.u32.totalorder %s672_s21, %s926_s16 }
 0x210   : > { %p674_p7 = pnand %p673_p4, %p807_p5 }
 0x211   : > { %p679_p11 = por %p678_p10, %p677_p9 }
 0x212   : > { %p675_p8 = pneg %p674_p7 }
 0x213   : > { %p681_p13 = por %p680_p12, %p679_p11 }
 0x215   : > { %p682_p0 = pnand %p681_p13, %p675_p8 }
 0x217   : > { %685 = shalt.err (!%p682_p0)
}
 0x218   : > { %s724_s9 = smov 256   ;;  %s725_s14 = smov 16  }
 0x219   : > { %590 = dma.vmem_to_hbm [thread:$0]  (%p807_p5), %s928_s10, 1024, %s926_s16, %s934_s2, %s724_s9, %s724_s9, %s725_s14  }
 0x21a PF: > { %p596_p1 = scmp.ge.s32.totalorder %s720_s29, 2  ;;  %s523_s15 = sand.u32 1, %s708_s26  }
 0x21b   : > { %s524_s17 = scalar_lea.sflag [#allocation4], %s523_s15 }
 0x21c   : > { %p593_p2 = pnand %p596_p1, %p811_p6 }
 0x21e   : > { %703 = dma.done.wait (!%p593_p2), %s524_s17, 1024  }
 0x21f   : > { %705 = vsyncadd (!%p593_p2), %s524_s17, 4294966272  ;;  %p18_p3 = scmp.ge.s32.totalorder %s794_s8, 4   ;;  %s985_s26 = smov %s712_s27 }
 0x220   : > { %s986_s27 = smov %s716_s28  ;;  %s987_s28 = smov %s805_s11 }
 0x221   : > { %s988_s29 = smov %s794_s8  ;;  %20 = sbr.rel (!%p18_p3) target bundleno = 5 (0x5), region = 83 }
 0x228   :  { %529 = vsyncpa [#allocation4], 1 }
 0x229   :  { %531 = vsyncpa [#allocation4 + $0x1], 1 }

</bundles_post_ra>
